<compile_context>
chip_gen: v7x
topology: tpu7x:2x2x1
jax: 0.10.0
libtpu: 0.0.40
codegen_flags: <defaults>
</compile_context>

<pallas_src>
import functools
import math

import jax
import jax.numpy as jnp
from jax.experimental import pallas as pl
from jax.experimental.pallas import tpu as pltpu


def _round_up(x: int, m: int) -> int:
    return ((x + m - 1) // m) * m


def decoder_kernel(z_ref, w1_ref, b1_ref, w3_ref, b3_ref, w4_ref, b4_ref, o_ref):
    """One grid step: a lane-dense slab of packed batch rows through the 3-layer MLP."""
    cdt = w1_ref.dtype                       # bf16 by default -> native MXU path
    x = z_ref[...].astype(cdt)
    # linear1 + ReLU (f32 accumulation via preferred_element_type)
    h = jnp.dot(x, w1_ref[...], preferred_element_type=jnp.float32) + b1_ref[...]
    h = jnp.maximum(h, 0.0)
    # linear3 + ReLU
    h = jnp.dot(h.astype(cdt), w3_ref[...], preferred_element_type=jnp.float32) + b3_ref[...]
    h = jnp.maximum(h, 0.0)
    # linear4 + Sigmoid
    h = jnp.dot(h.astype(cdt), w4_ref[...], preferred_element_type=jnp.float32) + b4_ref[...]
    # sigmoid(h) = 0.5*(tanh(h/2)+1): one EUP op, no VALU Newton steps for an exact divide.
    o_ref[...] = (0.5 * (jnp.tanh(0.5 * h) + 1.0)).astype(o_ref.dtype)


def pack_decoder_params(params, pack, weight_dtype=jnp.bfloat16):
    """Fold `pack` batch rows into one slab row: W -> kron(I_pack, W), b -> tile(b, pack).

    slab @ kron(I, W) + tile(b) computes `pack` independent copies of y = x @ W + b laid
    side by side along the lane axis (block-diagonal => exactly zero cross terms).
    Weights are cast to `weight_dtype` (bf16 default -> native MXU); biases stay f32
    (added to the f32 accumulator, so no precision loss there).
    """
    eye = jnp.eye(pack, dtype=jnp.float32)
    bd = lambda w: jnp.kron(eye, w.astype(jnp.float32)).astype(weight_dtype)
    tl = lambda b: jnp.tile(b.astype(jnp.float32).reshape(1, -1), (1, pack))
    return {"w1": bd(params["w1"]), "b1": tl(params["b1"]),
            "w3": bd(params["w3"]), "b3": tl(params["b3"]),
            "w4": bd(params["w4"]), "b4": tl(params["b4"])}


@functools.partial(jax.jit, static_argnames=("block_rows", "weight_dtype"))
def decoder_forward(z, params, *, block_rows=512, weight_dtype=jnp.bfloat16):
    """sigmoid(relu(relu(z @ W1 + b1) @ W3 + b3) @ W4 + b4), fused in one Pallas kernel.

    z: [B, input_size]. params: dict of transposed weights & biases.
    block_rows: max slab rows per grid step (1 slab row = `pack` batch rows); the default
    512 covers 8192 batch rows per step for output_size=8.
    """
    B, in_dim = z.shape
    out_dim = params["w4"].shape[1]

    # Pack factor: smallest P with P*out_dim % 128 == 0 (lane-dense, unmasked stores).
    pack = 128 // math.gcd(out_dim, 128)
    kp = pack_decoder_params(params, pack, weight_dtype)

    # Ragged batches: pad only to the pack boundary (<= pack-1 rows). Partial *grid*
    # blocks are handled by Pallas's non-divisible-block masking, so no padding to grid
    # block multiples is ever needed. B % pack == 0 is the zero-copy fast path.
    b_pack = _round_up(B, pack)
    if b_pack != B:
        z = jnp.pad(z, ((0, b_pack - B), (0, 0)))
    slab_rows = b_pack // pack
    z_slab = z.reshape(slab_rows, pack * in_dim)       # contiguous -> free reshape

    # Tile choice: multiple-of-8 sublanes; cap so there are >=2 grid steps whenever the
    # batch allows it (lets the "parallel" axis shard across v7x's two TensorCores).
    rows_per_block = min(block_rows, _round_up(pl.cdiv(slab_rows, 2), 8))
    if rows_per_block >= slab_rows:
        rows_per_block = slab_rows                     # single full-extent block (legal)
    grid_rows = pl.cdiv(slab_rows, rows_per_block)

    w_bytes = sum(int(v.size) * v.dtype.itemsize for v in kp.values())
    h1, h2 = kp["w1"].shape[1], kp["w3"].shape[1]
    cost = pl.CostEstimate(
        flops=2 * slab_rows * (kp["w1"].shape[0] * h1
                               + kp["w3"].shape[0] * h2
                               + kp["w4"].shape[0] * kp["w4"].shape[1]),
        transcendentals=slab_rows * pack * out_dim,    # one tanh per sigmoid output
        bytes_accessed=int(z_slab.size) * z_slab.dtype.itemsize
                       + slab_rows * pack * out_dim * 4 + w_bytes,
    )

    # Explicit VMEM budget: v7x has 64 MiB physical VMEM (32 MiB default scoped limit),
    # vs 128 MiB on v5e/v6e. Estimate the per-step footprint and clamp to 48 MiB.
    csize = kp["w1"].dtype.itemsize
    per_step = rows_per_block * (
        2 * pack * in_dim * z_slab.dtype.itemsize      # double-buffered input block
        + 2 * pack * out_dim * 4                       # double-buffered output block
        + (h1 + h2) * 4                                # f32 intermediates
        + (pack * in_dim + h1 + h2) * csize)           # low-precision matmul operands
    vmem_limit = int(min(max(2 * (per_step + w_bytes) + (4 << 20), 16 << 20), 48 << 20))

    rep = lambda i: (0, 0)   # constant index_map -> weights stay VMEM-resident across steps
    out_slab = pl.pallas_call(
        decoder_kernel,
        out_shape=jax.ShapeDtypeStruct((slab_rows, pack * out_dim), jnp.float32),
        grid_spec=pltpu.PrefetchScalarGridSpec(
            num_scalar_prefetch=0,
            grid=(grid_rows,),
            in_specs=[
                pl.BlockSpec((rows_per_block, pack * in_dim), lambda i: (i, 0)),  # z slab
                pl.BlockSpec(kp["w1"].shape, rep),
                pl.BlockSpec(kp["b1"].shape, rep),
                pl.BlockSpec(kp["w3"].shape, rep),
                pl.BlockSpec(kp["b3"].shape, rep),
                pl.BlockSpec(kp["w4"].shape, rep),
                pl.BlockSpec(kp["b4"].shape, rep),
            ],
            out_specs=pl.BlockSpec((rows_per_block, pack * out_dim), lambda i: (i, 0)),
        ),
        compiler_params=pltpu.CompilerParams(
            dimension_semantics=("parallel",),
            vmem_limit_bytes=vmem_limit),
        cost_estimate=cost,
    )(z_slab, kp["w1"], kp["b1"], kp["w3"], kp["b3"], kp["w4"], kp["b4"])

    out = out_slab.reshape(b_pack, out_dim)
    # Slice only for non-pack-aligned batches (avoids the copy on the common aligned path).
    return out if b_pack == B else out[:B]


def init_decoder_params(key, input_size, output_size):
    """torch.nn.Linear-style init (U(-1/sqrt(fan_in), 1/sqrt(fan_in))).
    Weights stored transposed: [in_features, out_features]."""
    def linear(k, fan_in, fan_out):
        kw, kb = jax.random.split(k)
        bound = 1.0 / jnp.sqrt(float(fan_in))
        w = jax.random.uniform(kw, (fan_in, fan_out), jnp.float32, -bound, bound)
        b = jax.random.uniform(kb, (1, fan_out), jnp.float32, -bound, bound)
        return w, b

    k1, k3, k4 = jax.random.split(key, 3)
    w1, b1 = linear(k1, input_size, 32)
    w3, b3 = linear(k3, 32, 24)
    w4, b4 = linear(k4, 24, output_size)
    return {"w1": w1, "b1": b1, "w3": w3, "b3": b3, "w4": w4, "b4": b4}


def decoder_reference(z, p):
    h = jnp.maximum(z @ p["w1"] + p["b1"], 0.0)
    h = jnp.maximum(h @ p["w3"] + p["b3"], 0.0)
    return jax.nn.sigmoid(h @ p["w4"] + p["b4"])


if __name__ == "__main__":
    key = jax.random.PRNGKey(0)
    k_param, k_z1, k_z2 = jax.random.split(key, 3)

    input_size, output_size = 16, 8
    params = init_decoder_params(k_param, input_size, output_size)

    # Pack-aligned small batch: zero-copy path (no pad, no slice), single full-extent block.
    z_small = jax.random.normal(k_z1, (64, input_size), jnp.float32)
    out_small = jax.block_until_ready(decoder_forward(z_small, params))
    assert out_small.shape == (64, output_size)
    ref_small = decoder_reference(z_small, params)
    # bf16 matmul path -> tolerance loosened vs. the f32 reference.
    assert jnp.allclose(out_small, ref_small, atol=2e-2, rtol=2e-2), (
        "max abs err", float(jnp.max(jnp.abs(out_small - ref_small))))

    # Ragged batch: pads only to the pack boundary, multi-step grid with a partial last block.
    z_odd = jax.random.normal(k_z2, (200, input_size), jnp.float32)
    out_odd = jax.block_until_ready(decoder_forward(z_odd, params))
    assert out_odd.shape == (200, output_size)
    ref_odd = decoder_reference(z_odd, params)
    assert jnp.allclose(out_odd, ref_odd, atol=2e-2, rtol=2e-2), (
        "max abs err", float(jnp.max(jnp.abs(out_odd - ref_odd))))

    print("KERNEL_OK")
</pallas_src>

<mosaic_0001>
module attributes {stable_mosaic.version = 11 : i64} {
  func.func @decoder_kernel(%arg0: i32, %arg1: memref<4x256xf32, #tpu.memory_space<vmem>>, %arg2: memref<256x512xbf16, #tpu.memory_space<vmem>>, %arg3: memref<1x512xf32, #tpu.memory_space<vmem>>, %arg4: memref<512x384xbf16, #tpu.memory_space<vmem>>, %arg5: memref<1x384xf32, #tpu.memory_space<vmem>>, %arg6: memref<384x128xbf16, #tpu.memory_space<vmem>>, %arg7: memref<1x128xf32, #tpu.memory_space<vmem>>, %arg8: memref<4x128xf32, #tpu.memory_space<vmem>>) attributes {dimension_semantics = [#tpu.dimension_semantics<parallel>], iteration_bounds = array<i64: 1>, scalar_prefetch = 0 : i64, scratch_operands = 0 : i64, tpu.core_type = #tpu.core_type<tc>, window_params = [{transform_indices = @transform_0, window_bounds = array<i64: 4, 256>}, {pipeline_mode = #tpu.pipeline_mode<synchronous>, transform_indices = @transform_1, window_bounds = array<i64: 256, 512>}, {pipeline_mode = #tpu.pipeline_mode<synchronous>, transform_indices = @transform_2, window_bounds = array<i64: 1, 512>}, {pipeline_mode = #tpu.pipeline_mode<synchronous>, transform_indices = @transform_3, window_bounds = array<i64: 512, 384>}, {pipeline_mode = #tpu.pipeline_mode<synchronous>, transform_indices = @transform_4, window_bounds = array<i64: 1, 384>}, {pipeline_mode = #tpu.pipeline_mode<synchronous>, transform_indices = @transform_5, window_bounds = array<i64: 384, 128>}, {pipeline_mode = #tpu.pipeline_mode<synchronous>, transform_indices = @transform_6, window_bounds = array<i64: 1, 128>}, {transform_indices = @transform_7, window_bounds = array<i64: 4, 128>}]} {
    %c0 = arith.constant 0 : index
    %c0_0 = arith.constant 0 : index
    %0 = vector.load %arg1[%c0, %c0_0] : memref<4x256xf32, #tpu.memory_space<vmem>>, vector<4x256xf32>
    %1 = arith.truncf %0 : vector<4x256xf32> to vector<4x256xbf16>
    %c0_1 = arith.constant 0 : index
    %c0_2 = arith.constant 0 : index
    %2 = vector.load %arg2[%c0_1, %c0_2] : memref<256x512xbf16, #tpu.memory_space<vmem>>, vector<256x512xbf16>
    %cst = arith.constant dense<0.000000e+00> : vector<4x512xf32>
    %3 = tpu.matmul %1, %2, %cst {dimension_numbers = #tpu.dot_dimension_numbers<[1], [0], [0], [1], [0, 0, 1, 1], [], []>} : vector<4x256xbf16>, vector<256x512xbf16>, vector<4x512xf32> -> vector<4x512xf32>
    %c0_3 = arith.constant 0 : index
    %c0_4 = arith.constant 0 : index
    %4 = vector.load %arg3[%c0_3, %c0_4] : memref<1x512xf32, #tpu.memory_space<vmem>>, vector<1x512xf32>
    %5 = vector.broadcast %4 : vector<1x512xf32> to vector<4x512xf32>
    %6 = arith.addf %3, %5 : vector<4x512xf32>
    %cst_5 = arith.constant 0.000000e+00 : f32
    %7 = vector.broadcast %cst_5 : f32 to vector<4x512xf32>
    %8 = arith.maximumf %6, %7 : vector<4x512xf32>
    %9 = arith.truncf %8 : vector<4x512xf32> to vector<4x512xbf16>
    %c0_6 = arith.constant 0 : index
    %c0_7 = arith.constant 0 : index
    %10 = vector.load %arg4[%c0_6, %c0_7] : memref<512x384xbf16, #tpu.memory_space<vmem>>, vector<512x384xbf16>
    %cst_8 = arith.constant dense<0.000000e+00> : vector<4x384xf32>
    %11 = tpu.matmul %9, %10, %cst_8 {dimension_numbers = #tpu.dot_dimension_numbers<[1], [0], [0], [1], [0, 0, 1, 1], [], []>} : vector<4x512xbf16>, vector<512x384xbf16>, vector<4x384xf32> -> vector<4x384xf32>
    %c0_9 = arith.constant 0 : index
    %c0_10 = arith.constant 0 : index
    %12 = vector.load %arg5[%c0_9, %c0_10] : memref<1x384xf32, #tpu.memory_space<vmem>>, vector<1x384xf32>
    %13 = vector.broadcast %12 : vector<1x384xf32> to vector<4x384xf32>
    %14 = arith.addf %11, %13 : vector<4x384xf32>
    %cst_11 = arith.constant 0.000000e+00 : f32
    %15 = vector.broadcast %cst_11 : f32 to vector<4x384xf32>
    %16 = arith.maximumf %14, %15 : vector<4x384xf32>
    %17 = arith.truncf %16 : vector<4x384xf32> to vector<4x384xbf16>
    %c0_12 = arith.constant 0 : index
    %c0_13 = arith.constant 0 : index
    %18 = vector.load %arg6[%c0_12, %c0_13] : memref<384x128xbf16, #tpu.memory_space<vmem>>, vector<384x128xbf16>
    %cst_14 = arith.constant dense<0.000000e+00> : vector<4x128xf32>
    %19 = tpu.matmul %17, %18, %cst_14 {dimension_numbers = #tpu.dot_dimension_numbers<[1], [0], [0], [1], [0, 0, 1, 1], [], []>} : vector<4x384xbf16>, vector<384x128xbf16>, vector<4x128xf32> -> vector<4x128xf32>
    %c0_15 = arith.constant 0 : index
    %c0_16 = arith.constant 0 : index
    %20 = vector.load %arg7[%c0_15, %c0_16] : memref<1x128xf32, #tpu.memory_space<vmem>>, vector<1x128xf32>
    %21 = vector.broadcast %20 : vector<1x128xf32> to vector<4x128xf32>
    %22 = arith.addf %19, %21 : vector<4x128xf32>
    %cst_17 = arith.constant 5.000000e-01 : f32
    %23 = vector.broadcast %cst_17 : f32 to vector<4x128xf32>
    %24 = arith.mulf %23, %22 : vector<4x128xf32>
    %25 = math.tanh %24 : vector<4x128xf32>
    %cst_18 = arith.constant 1.000000e+00 : f32
    %26 = vector.broadcast %cst_18 : f32 to vector<4x128xf32>
    %27 = arith.addf %25, %26 : vector<4x128xf32>
    %cst_19 = arith.constant 5.000000e-01 : f32
    %28 = vector.broadcast %cst_19 : f32 to vector<4x128xf32>
    %29 = arith.mulf %28, %27 : vector<4x128xf32>
    %c0_20 = arith.constant 0 : index
    %c0_21 = arith.constant 0 : index
    %30 = vector.load %arg8[%c0_20, %c0_21] : memref<4x128xf32, #tpu.memory_space<vmem>>, vector<4x128xf32>
    tpu.vector_store %arg8[%c0_20, %c0_21], %29 {strides = array<i32>} : memref<4x128xf32, #tpu.memory_space<vmem>>, vector<4x128xf32>,
    return
  }
  func.func @transform_0(%arg0: i32) -> (i32, i32) {
    %c0_i32 = arith.constant 0 : i32
    %c0_i32_0 = arith.constant 0 : i32
    return %arg0, %c0_i32 : i32, i32
  }
  func.func @transform_1(%arg0: i32) -> (i32, i32) {
    %c0_i32 = arith.constant 0 : i32
    %c0_i32_0 = arith.constant 0 : i32
    %c0_i32_1 = arith.constant 0 : i32
    return %c0_i32, %c0_i32_0 : i32, i32
  }
  func.func @transform_2(%arg0: i32) -> (i32, i32) {
    %c0_i32 = arith.constant 0 : i32
    %c0_i32_0 = arith.constant 0 : i32
    %c0_i32_1 = arith.constant 0 : i32
    return %c0_i32, %c0_i32_0 : i32, i32
  }
  func.func @transform_3(%arg0: i32) -> (i32, i32) {
    %c0_i32 = arith.constant 0 : i32
    %c0_i32_0 = arith.constant 0 : i32
    %c0_i32_1 = arith.constant 0 : i32
    return %c0_i32, %c0_i32_0 : i32, i32
  }
  func.func @transform_4(%arg0: i32) -> (i32, i32) {
    %c0_i32 = arith.constant 0 : i32
    %c0_i32_0 = arith.constant 0 : i32
    %c0_i32_1 = arith.constant 0 : i32
    return %c0_i32, %c0_i32_0 : i32, i32
  }
  func.func @transform_5(%arg0: i32) -> (i32, i32) {
    %c0_i32 = arith.constant 0 : i32
    %c0_i32_0 = arith.constant 0 : i32
    %c0_i32_1 = arith.constant 0 : i32
    return %c0_i32, %c0_i32_0 : i32, i32
  }
  func.func @transform_6(%arg0: i32) -> (i32, i32) {
    %c0_i32 = arith.constant 0 : i32
    %c0_i32_0 = arith.constant 0 : i32
    %c0_i32_1 = arith.constant 0 : i32
    return %c0_i32, %c0_i32_0 : i32, i32
  }
  func.func @transform_7(%arg0: i32) -> (i32, i32) {
    %c0_i32 = arith.constant 0 : i32
    %c0_i32_0 = arith.constant 0 : i32
    return %arg0, %c0_i32 : i32, i32
  }
}

</mosaic_0001>

<bundles_post_ra>
// kernel: decoder_forward.1
= control target key start
LH: loop header
LB: loop body
LE: loop exit
PB: predicated region body
PF: predicated region fallthrough
CT: control target
= control target key end

     0   :  { %vm2182_vm0 = vmmov 0   ;;  %s2814_s1 = inlined_call_operand.vmem [shape: bf16[256,512], index: 1, kind: input, shape index: {}]   ;;  %s2815_s0 = inlined_call_operand.vmem [shape: f32[4,256], index: 0, kind: input, shape index: {}]   ;;  %s2816_s3 = inlined_call_operand.vmem [shape: bf16[512,384], index: 3, kind: input, shape index: {}]   ;;  %s2817_s2 = inlined_call_operand.vmem [shape: f32[1,512], index: 2, kind: input, shape index: {}]   ;;  %s2818_s5 = inlined_call_operand.vmem [shape: bf16[384,128], index: 5, kind: input, shape index: {}]   ;;  %s2819_s4 = inlined_call_operand.vmem [shape: f32[1,384], index: 4, kind: input, shape index: {}]   ;;  %s2820_s6 = inlined_call_operand.vmem [shape: f32[1,128], index: 6, kind: input, shape index: {}]   ;;  %s2821_s7 = inlined_call_operand.vmem [shape: f32[4,128], index: 7, kind: output, shape index: {}]  }
   0x1   :  { %v1930_v0 = vld [vmem:[%s2814_s1 + $0x4] ss:$16 sps:$4 sm:$0xff]   ;;  %v1932_v1 = vld [vmem:[%s2814_s1] ss:$16 sps:$4 sm:$0xff]   ;;  %v1954_v8 = vld [vmem:[%s2814_s1 + $0xc] ss:$16 sps:$4 sm:$0xff]  }
   0x2   :  { %439 = vmatprep.subr.bf16.mxu0 %v1930_v0  ;;  %v1933_v2 = vld [vmem:[%s2814_s1 + $0x24] ss:$16 sps:$4 sm:$0xff]   ;;  %v1935_v3 = vld [vmem:[%s2814_s1 + $0x20] ss:$16 sps:$4 sm:$0xff]   ;;  %v1958_v10 = vld [vmem:[%s2814_s1 + $0x8] ss:$16 sps:$4 sm:$0xff]   ;;  %480 = vmatprep.subr.bf16.mxu1 %v1954_v8 }
   0x3   :  { %440 = vmatpush1.bf16.msra.mxu0 %v1932_v1  ;;  %v1936_v4 = vld [vmem:[%s2814_s1 + $0x44] ss:$16 sps:$4 sm:$0xff]   ;;  %v1938_v5 = vld [vmem:[%s2814_s1 + $0x40] ss:$16 sps:$4 sm:$0xff]   ;;  %481 = vmatpush1.bf16.msra.mxu1 %v1958_v10  ;;  %v1960_v11 = vld [vmem:[%s2814_s1 + $0x2c] ss:$16 sps:$4 sm:$0xff]  }
   0x4   :  { %441 = vmatprep.subr.bf16.mxu0 %v1933_v2  ;;  %v1939_v6 = vld [vmem:[%s2814_s1 + $0x64] ss:$16 sps:$4 sm:$0xff]   ;;  %v1941_v7 = vld [vmem:[%s2814_s1 + $0x60] ss:$16 sps:$4 sm:$0xff]   ;;  %v1964_v14 = vld [vmem:[%s2814_s1 + $0x28] ss:$16 sps:$4 sm:$0xff]   ;;  %482 = vmatprep.subr.bf16.mxu1 %v1960_v11 }
   0x5   :  { %v1942_v9 = vld [vmem:[%s2814_s1 + $0x84] ss:$16 sps:$4 sm:$0xff]   ;;  %v1944_v12 = vld [vmem:[%s2814_s1 + $0x80] ss:$16 sps:$4 sm:$0xff]   ;;  %v1966_v15 = vld [vmem:[%s2814_s1 + $0x4c] ss:$16 sps:$4 sm:$0xff]  }
   0x6   :  { %v1945_v13 = vld [vmem:[%s2814_s1 + $0xa4] ss:$16 sps:$4 sm:$0xff]   ;;  %v1947_v16 = vld [vmem:[%s2814_s1 + $0xa0] ss:$16 sps:$4 sm:$0xff]   ;;  %v1970_v17 = vld [vmem:[%s2814_s1 + $0x48] ss:$16 sps:$4 sm:$0xff]  }
   0x7   :  { %442 = vmatpush1.bf16.msra.mxu0 %v1935_v3  ;;  %483 = vmatpush1.bf16.msra.mxu1 %v1964_v14  ;;  %v1972_v18 = vld [vmem:[%s2814_s1 + $0x6c] ss:$16 sps:$4 sm:$0xff]   ;;  %v1948_v19 = vld [vmem:[%s2814_s1 + $0xc4] ss:$16 sps:$4 sm:$0xff]   ;;  %v1976_v20 = vld [vmem:[%s2814_s1 + $0x68] ss:$16 sps:$4 sm:$0xff]  }
   0x8   :  { %443 = vmatprep.subr.bf16.mxu0 %v1936_v4  ;;  %484 = vmatprep.subr.bf16.mxu1 %v1966_v15  ;;  %v1950_v21 = vld [vmem:[%s2814_s1 + $0xc0] ss:$16 sps:$4 sm:$0xff]   ;;  %v1978_v22 = vld [vmem:[%s2814_s1 + $0x8c] ss:$16 sps:$4 sm:$0xff]   ;;  %v1951_v23 = vld [vmem:[%s2814_s1 + $0xe4] ss:$16 sps:$4 sm:$0xff]  }
   0x9   :  { %v1953_v24 = vld [vmem:[%s2814_s1 + $0xe0] ss:$16 sps:$4 sm:$0xff]   ;;  %v1982_v25 = vld [vmem:[%s2814_s1 + $0x88] ss:$16 sps:$4 sm:$0xff]   ;;  %v1984_v26 = vld [vmem:[%s2814_s1 + $0xac] ss:$16 sps:$4 sm:$0xff]  }
   0xa   :  { %v1956_v27 = vld [vmem:[%s2814_s1 + $0x104] ss:$16 sps:$4 sm:$0xff]   ;;  %v1988_v28 = vld [vmem:[%s2814_s1 + $0xa8] ss:$16 sps:$4 sm:$0xff]   ;;  %v1959_v29 = vld [vmem:[%s2814_s1 + $0x100] ss:$16 sps:$4 sm:$0xff]  }
   0xb   :  { %444 = vmatpush1.bf16.msra.mxu0 %v1938_v5  ;;  %485 = vmatpush1.bf16.msra.mxu1 %v1970_v17  ;;  %v1962_v30 = vld [vmem:[%s2814_s1 + $0x124] ss:$16 sps:$4 sm:$0xff]   ;;  %v1990_v31 = vld [vmem:[%s2814_s1 + $0xcc] ss:$16 sps:$4 sm:$0xff]   ;;  %v1965_v34 = vld [vmem:[%s2814_s1 + $0x120] ss:$16 sps:$4 sm:$0xff]  }
   0xc   :  { %445 = vmatprep.subr.bf16.mxu0 %v1939_v6  ;;  %486 = vmatprep.subr.bf16.mxu1 %v1972_v18  ;;  %v27_v32 = vld [vmem:[%s2815_s0] sm:$0xff]  ;;  %v1994_v35 = vld [vmem:[%s2814_s1 + $0xc8] ss:$16 sps:$4 sm:$0xff]   ;;  %v1996_v36 = vld [vmem:[%s2814_s1 + $0xec] ss:$16 sps:$4 sm:$0xff]  }
   0xd   :  { %v29_v33 = vcombine.high %v27_v32, %v27_v32  ;;  %v1968_v38 = vld [vmem:[%s2814_s1 + $0x144] ss:$16 sps:$4 sm:$0xff]   ;;  %v1971_v39 = vld [vmem:[%s2814_s1 + $0x140] ss:$16 sps:$4 sm:$0xff]   ;;  %v2000_v40 = vld [vmem:[%s2814_s1 + $0xe8] ss:$16 sps:$4 sm:$0xff]   ;;  %v31_v0 = vpack.c.bf16 %v27_v32, %v27_v32 }
   0xe   :  { %v2003_v41 = vld [vmem:[%s2814_s1 + $0x10c] ss:$16 sps:$4 sm:$0xff]   ;;  %v1974_v42 = vld [vmem:[%s2814_s1 + $0x164] ss:$16 sps:$4 sm:$0xff]   ;;  %v1977_v43 = vld [vmem:[%s2814_s1 + $0x160] ss:$16 sps:$4 sm:$0xff]  }
   0xf   :  { %446 = vmatpush1.bf16.msra.mxu0 %v1941_v7  ;;  %487 = vmatpush1.bf16.msra.mxu1 %v1976_v20  ;;  %v32_v37 = vpack.c.bf16 %v29_v33, %v29_v33  ;;  %v2005_v44 = vld [vmem:[%s2814_s1 + $0x108] ss:$16 sps:$4 sm:$0xff]   ;;  %v2006_v45 = vld [vmem:[%s2814_s1 + $0x12c] ss:$16 sps:$4 sm:$0xff]   ;;  %v1980_v46 = vld [vmem:[%s2814_s1 + $0x184] ss:$16 sps:$4 sm:$0xff]  }
  0x10   :  { %447 = vmatprep.subr.bf16.mxu0 %v1942_v9  ;;  %488 = vmatprep.subr.bf16.mxu1 %v1978_v22  ;;  %v1983_v47 = vld [vmem:[%s2814_s1 + $0x180] ss:$16 sps:$4 sm:$0xff]   ;;  %v2008_v48 = vld [vmem:[%s2814_s1 + $0x128] ss:$16 sps:$4 sm:$0xff]   ;;  %v2009_v49 = vld [vmem:[%s2814_s1 + $0x14c] ss:$16 sps:$4 sm:$0xff]  }
  0x11   :  { %471 = vmatprep.mubr.bf16.mxu0 %v32_v37  ;;  %512 = vmatprep.mubr.bf16.mxu1 %v32_v37  ;;  %v1986_v50 = vld [vmem:[%s2814_s1 + $0x1a4] ss:$16 sps:$4 sm:$0xff]   ;;  %v1989_v51 = vld [vmem:[%s2814_s1 + $0x1a0] ss:$16 sps:$4 sm:$0xff]   ;;  %v2011_v52 = vld [vmem:[%s2814_s1 + $0x148] ss:$16 sps:$4 sm:$0xff]  }
  0x12   :  { %v2012_v53 = vld [vmem:[%s2814_s1 + $0x16c] ss:$16 sps:$4 sm:$0xff]   ;;  %v1992_v54 = vld [vmem:[%s2814_s1 + $0x1c4] ss:$16 sps:$4 sm:$0xff]   ;;  %v1995_v55 = vld [vmem:[%s2814_s1 + $0x1c0] ss:$16 sps:$4 sm:$0xff]  }
  0x13   :  { %448 = vmatpush1.bf16.msra.mxu0 %v1944_v12  ;;  %489 = vmatpush1.bf16.msra.mxu1 %v1982_v25  ;;  %v2014_v56 = vld [vmem:[%s2814_s1 + $0x168] ss:$16 sps:$4 sm:$0xff]   ;;  %v2015_v57 = vld [vmem:[%s2814_s1 + $0x18c] ss:$16 sps:$4 sm:$0xff]   ;;  %v1998_v58 = vld [vmem:[%s2814_s1 + $0x1e4] ss:$16 sps:$4 sm:$0xff]  }
  0x14   :  { %449 = vmatprep.subr.bf16.mxu0 %v1945_v13  ;;  %490 = vmatprep.subr.bf16.mxu1 %v1984_v26  ;;  %v2001_v59 = vld [vmem:[%s2814_s1 + $0x1e0] ss:$16 sps:$4 sm:$0xff]   ;;  %v2017_v60 = vld [vmem:[%s2814_s1 + $0x188] ss:$16 sps:$4 sm:$0xff]   ;;  %v2018_v61 = vld [vmem:[%s2814_s1 + $0x1ac] ss:$16 sps:$4 sm:$0xff]  }
  0x15   :  { %v2029_v62 = vld [vmem:[%s2816_s3 + $0x4] ss:$12 sps:$4 sm:$0xff]   ;;  %v2020_v63 = vld [vmem:[%s2814_s1 + $0x1a8] ss:$16 sps:$4 sm:$0xff]   ;;  %v2021_v1 = vld [vmem:[%s2814_s1 + $0x1cc] ss:$16 sps:$4 sm:$0xff]  }
  0x16   :  { %v2027_v2 = vld [vmem:[%s2816_s3] ss:$12 sps:$4 sm:$0xff]   ;;  %v2032_v3 = vld [vmem:[%s2816_s3 + $0x1c] ss:$12 sps:$4 sm:$0xff]   ;;  %v2030_v6 = vld [vmem:[%s2816_s3 + $0x18] ss:$12 sps:$4 sm:$0xff]  }
  0x17   :  { %450 = vmatpush1.bf16.msra.mxu0 %v1947_v16  ;;  %491 = vmatpush1.bf16.msra.mxu1 %v1988_v28  ;;  %v2023_v4 = vld [vmem:[%s2814_s1 + $0x1c8] ss:$16 sps:$4 sm:$0xff]   ;;  %v2024_v5 = vld [vmem:[%s2814_s1 + $0x1ec] ss:$16 sps:$4 sm:$0xff]   ;;  %v2035_v7 = vld [vmem:[%s2816_s3 + $0x34] ss:$12 sps:$4 sm:$0xff]  }
  0x18   :  { %451 = vmatprep.subr.bf16.mxu0 %v1948_v19  ;;  %492 = vmatprep.subr.bf16.mxu1 %v1990_v31  ;;  %v2026_v8 = vld [vmem:[%s2814_s1 + $0x1e8] ss:$16 sps:$4 sm:$0xff]   ;;  %v2033_v9 = vld [vmem:[%s2816_s3 + $0x30] ss:$12 sps:$4 sm:$0xff]   ;;  %v2059_v14 = vld [vmem:[%s2816_s3 + $0xe0] ss:$12 sps:$4 sm:$0xff]  }
  0x19   :  { %v2054_v10 = vld [vmem:[%s2816_s3 + $0xc8] ss:$12 sps:$4 sm:$0xff]   ;;  %v2038_v11 = vld [vmem:[%s2816_s3 + $0x4c] ss:$12 sps:$4 sm:$0xff]   ;;  %v2041_v15 = vld [vmem:[%s2816_s3 + $0x64] ss:$12 sps:$4 sm:$0xff]  }
  0x1a   :  { %v2036_v12 = vld [vmem:[%s2816_s3 + $0x48] ss:$12 sps:$4 sm:$0xff]   ;;  %v2060_v16 = vld [vmem:[%s2816_s3 + $0x20] ss:$12 sps:$4 sm:$0xff]   ;;  %v2064_v18 = vld [vmem:[%s2816_s3 + $0xf8] ss:$12 sps:$4 sm:$0xff]  }
  0x1b   :  { %452 = vmatpush1.bf16.msra.mxu0 %v1950_v21  ;;  %493 = vmatpush1.bf16.msra.mxu1 %v1994_v35  ;;  %v2055_v13 = vld [vmem:[%s2816_s3 + $0x8] ss:$12 sps:$4 sm:$0xff]   ;;  %v2039_v17 = vld [vmem:[%s2816_s3 + $0x60] ss:$12 sps:$4 sm:$0xff]   ;;  %v2065_v20 = vld [vmem:[%s2816_s3 + $0x38] ss:$12 sps:$4 sm:$0xff]  }
  0x1c   :  { %453 = vmatprep.subr.bf16.mxu0 %v1951_v23  ;;  %494 = vmatprep.subr.bf16.mxu1 %v1996_v36  ;;  %v2044_v19 = vld [vmem:[%s2816_s3 + $0x7c] ss:$12 sps:$4 sm:$0xff]   ;;  %v2042_v21 = vld [vmem:[%s2816_s3 + $0x78] ss:$12 sps:$4 sm:$0xff]   ;;  %v2047_v23 = vld [vmem:[%s2816_s3 + $0x94] ss:$12 sps:$4 sm:$0xff]  }
  0x1d   :  { %v2069_v22 = vld [vmem:[%s2816_s3 + $0x110] ss:$12 sps:$4 sm:$0xff]   ;;  %v2074_v26 = vld [vmem:[%s2816_s3 + $0x128] ss:$12 sps:$4 sm:$0xff]   ;;  %v2080_v32 = vld [vmem:[%s2816_s3 + $0x80] ss:$12 sps:$4 sm:$0xff]  }
  0x1e   :  { %v2045_v25 = vld [vmem:[%s2816_s3 + $0x90] ss:$12 sps:$4 sm:$0xff]   ;;  %v2075_v28 = vld [vmem:[%s2816_s3 + $0x68] ss:$12 sps:$4 sm:$0xff]   ;;  %v2051_v33 = vld [vmem:[%s2816_s3 + $0xc0] ss:$12 sps:$4 sm:$0xff]  }
  0x1f   :  { %454 = vmatpush1.bf16.msra.mxu0 %v1953_v24  ;;  %495 = vmatpush1.bf16.msra.mxu1 %v2000_v40  ;;  %v2070_v24 = vld [vmem:[%s2816_s3 + $0x50] ss:$12 sps:$4 sm:$0xff]   ;;  %v2056_v35 = vld [vmem:[%s2816_s3 + $0xd8] ss:$12 sps:$4 sm:$0xff]   ;;  %v2063_v36 = vld [vmem:[%s2816_s3 + $0xf4] ss:$12 sps:$4 sm:$0xff]  }
  0x20   :  { %455 = vmatprep.subr.bf16.mxu0 %v1956_v27  ;;  %496 = vmatprep.subr.bf16.mxu1 %v2003_v41  ;;  %v2050_v27 = vld [vmem:[%s2816_s3 + $0xac] ss:$12 sps:$4 sm:$0xff]   ;;  %v2053_v31 = vld [vmem:[%s2816_s3 + $0xc4] ss:$12 sps:$4 sm:$0xff]  }
  0x21   :  { %v2061_v37 = vld [vmem:[%s2816_s3 + $0xf0] ss:$12 sps:$4 sm:$0xff]   ;;  %v2071_v41 = vld [vmem:[%s2816_s3 + $0x120] ss:$12 sps:$4 sm:$0xff]  }
  0x22   :  { %v2073_v40 = vld [vmem:[%s2816_s3 + $0x124] ss:$12 sps:$4 sm:$0xff]  }
  0x23   :  { %456 = vmatpush1.bf16.msra.mxu0 %v1959_v29  ;;  %497 = vmatpush1.bf16.msra.mxu1 %v2005_v44  ;;  %v2048_v29 = vld [vmem:[%s2816_s3 + $0xa8] ss:$12 sps:$4 sm:$0xff]  }
  0x24   :  { %457 = vmatprep.subr.bf16.mxu0 %v1962_v30  ;;  %498 = vmatprep.subr.bf16.mxu1 %v2006_v45  ;;  %v2079_v30 = vld [vmem:[%s2816_s3 + $0x140] ss:$12 sps:$4 sm:$0xff]   ;;  %v2084_v45 = vld [vmem:[%s2816_s3 + $0x158] ss:$12 sps:$4 sm:$0xff]  }
  0x25   :  { %v2083_v44 = vld [vmem:[%s2816_s3 + $0x154] ss:$12 sps:$4 sm:$0xff]  }
  0x27   :  { %458 = vmatpush1.bf16.msra.mxu0 %v1965_v34  ;;  %499 = vmatpush1.bf16.msra.mxu1 %v2008_v48  ;;  %v2058_v34 = vld [vmem:[%s2816_s3 + $0xdc] ss:$12 sps:$4 sm:$0xff]   ;;  %v2088_v48 = vld [vmem:[%s2816_s3 + $0x16c] ss:$12 sps:$4 sm:$0xff]  }
  0x28   :  { %459 = vmatprep.subr.bf16.mxu0 %v1968_v38  ;;  %500 = vmatprep.subr.bf16.mxu1 %v2009_v49  ;;  %v2068_v38 = vld [vmem:[%s2816_s3 + $0x10c] ss:$12 sps:$4 sm:$0xff]   ;;  %v2089_v49 = vld [vmem:[%s2816_s3 + $0x170] ss:$12 sps:$4 sm:$0xff]  }
  0x2b   :  { %460 = vmatpush1.bf16.msra.mxu0 %v1971_v39  ;;  %501 = vmatpush1.bf16.msra.mxu1 %v2011_v52  ;;  %v2066_v39 = vld [vmem:[%s2816_s3 + $0x108] ss:$12 sps:$4 sm:$0xff]   ;;  %v2093_v52 = vld [vmem:[%s2816_s3 + $0x184] ss:$12 sps:$4 sm:$0xff]  }
  0x2c   :  { %461 = vmatprep.subr.bf16.mxu0 %v1974_v42  ;;  %502 = vmatprep.subr.bf16.mxu1 %v2012_v53  ;;  %v2078_v42 = vld [vmem:[%s2816_s3 + $0x13c] ss:$12 sps:$4 sm:$0xff]  }
  0x2d   :  { %v2094_v53 = vld [vmem:[%s2816_s3 + $0x248] ss:$12 sps:$4 sm:$0xff]  }
  0x2f   :  { %462 = vmatpush1.bf16.msra.mxu0 %v1977_v43  ;;  %503 = vmatpush1.bf16.msra.mxu1 %v2014_v56  ;;  %v2076_v43 = vld [vmem:[%s2816_s3 + $0x138] ss:$12 sps:$4 sm:$0xff]  }
  0x30   :  { %463 = vmatprep.subr.bf16.mxu0 %v1980_v46  ;;  %504 = vmatprep.subr.bf16.mxu1 %v2015_v57  ;;  %v2081_v46 = vld [vmem:[%s2816_s3 + $0x150] ss:$12 sps:$4 sm:$0xff]   ;;  %v2574_v57 = vld [vmem:[%s2817_s2] sm:$0xf] }
  0x33   :  { %464 = vmatpush1.bf16.msra.mxu0 %v1983_v47  ;;  %505 = vmatpush1.bf16.msra.mxu1 %v2017_v60  ;;  %v2085_v47 = vld [vmem:[%s2816_s3 + $0x98] ss:$12 sps:$4 sm:$0xff]  }
  0x34   :  { %465 = vmatprep.subr.bf16.mxu0 %v1986_v50  ;;  %506 = vmatprep.subr.bf16.mxu1 %v2018_v61  ;;  %v2086_v50 = vld [vmem:[%s2816_s3 + $0x168] ss:$12 sps:$4 sm:$0xff]  }
  0x37   :  { %466 = vmatpush1.bf16.msra.mxu0 %v1989_v51  ;;  %507 = vmatpush1.bf16.msra.mxu1 %v2020_v63  ;;  %v2090_v51 = vld [vmem:[%s2816_s3 + $0xb0] ss:$12 sps:$4 sm:$0xff]  }
  0x38   :  { %467 = vmatprep.subr.bf16.mxu0 %v1992_v54  ;;  %508 = vmatprep.subr.bf16.mxu1 %v2021_v1  ;;  %v99_v54 = vlaneseq }
  0x3b   :  { %468 = vmatpush1.bf16.msra.mxu0 %v1995_v55  ;;  %509 = vmatpush1.bf16.msra.mxu1 %v2023_v4  ;;  %v2568_v55 = vshrl.u32 %v99_v54, 7  ;;  %v2134_v54 = vld [vmem:[%s2816_s3 + $0x258] ss:$12 sps:$4 sm:$0xff]  }
  0x3c   :  { %469 = vmatprep.subr.bf16.mxu0 %v1998_v58  ;;  %510 = vmatprep.subr.bf16.mxu1 %v2024_v5 }
  0x3d   :  { %v101_v56 = vsub.s32 0, %v2568_v55  ;;  %v105_v58 = vsub.s32 1, %v2568_v55  ;;  %v113_v5 = vsub.s32 3, %v2568_v55 }
  0x3f   :  { %470 = vmatpush1.bf16.msra.mxu0 %v2001_v59  ;;  %511 = vmatpush1.bf16.msra.mxu1 %v2026_v8  ;;  %v102_v59 = vrot.slane %v2574_v57, %v101_v56  ;;  %v106_v60 = vrot.slane %v2574_v57, %v105_v58  ;;  %v2095_v8 = vld [vmem:[%s2816_s3 + $0x188] ss:$12 sps:$4 sm:$0xff]  }
  0x40   :  { %1186 = vmatprep.subr.bf16.mxu0 %v2029_v62  ;;  %1827 = vmatprep.subr.bf16.mxu1 %v2054_v10  ;;  %v2098_v10 = vld [vmem:[%s2816_s3 + $0x19c] ss:$12 sps:$4 sm:$0xff]  }
  0x42   :  { %472 = vmatmul.mubr.bf16.vlgmr.msra.gmra.mrb[0].mxu0 %v31_v0  ;;  %513 = vmatmul.mubr.bf16.vlgmr.msra.gmra.mrb[0].mxu1 %v31_v0 }
  0x43   :  { %1187 = vmatpush1.bf16.msra.mxu0 %v2027_v2  ;;  %1828 = vmatpush3.bf16.msra.mxu1 %v2055_v13  ;;  %v2096_v13 = vld [vmem:[%s2816_s3 + $0x198] ss:$12 sps:$4 sm:$0xff]  }
  0x44   :  { %1188 = vmatprep.subr.bf16.mxu0 %v2032_v3  ;;  %1829 = vmatprep.subr.bf16.mxu1 %v2059_v14  ;;  %v2100_v14 = vld [vmem:[%s2816_s3 + $0x1a0] ss:$12 sps:$4 sm:$0xff]  }
  0x47   :  { %1189 = vmatpush1.bf16.msra.mxu0 %v2030_v6  ;;  %1830 = vmatpush3.bf16.msra.mxu1 %v2060_v16  ;;  %v2104_v16 = vld [vmem:[%s2816_s3 + $0x278] ss:$12 sps:$4 sm:$0xff]  }
  0x48   :  { %1190 = vmatprep.subr.bf16.mxu0 %v2035_v7  ;;  %1831 = vmatprep.subr.bf16.mxu1 %v2064_v18  ;;  %v2091_v7 = vld [vmem:[%s2816_s3 + $0x180] ss:$12 sps:$4 sm:$0xff]  }
  0x4b   :  { %1191 = vmatpush1.bf16.msra.mxu0 %v2033_v9  ;;  %1832 = vmatpush3.bf16.msra.mxu1 %v2065_v20 }
  0x4c   :  { %1192 = vmatprep.subr.bf16.mxu0 %v2038_v11  ;;  %1833 = vmatprep.subr.bf16.mxu1 %v2069_v22  ;;  %v2099_v11 = vld [vmem:[%s2816_s3 + $0x260] ss:$12 sps:$4 sm:$0xff]   ;;  %v2105_v22 = vld [vmem:[%s2816_s3 + $0x1b8] ss:$12 sps:$4 sm:$0xff]  }
  0x4f   :  { %1193 = vmatpush1.bf16.msra.mxu0 %v2036_v12  ;;  %1834 = vmatpush3.bf16.msra.mxu1 %v2070_v24  ;;  %v114_v12 = vrot.slane %v2574_v57, %v113_v5  ;;  %v2108_v24 = vld [vmem:[%s2816_s3 + $0x1cc] ss:$12 sps:$4 sm:$0xff]   ;;  %v2152_v5 = vld [vmem:[%s2816_s3 + $0x2e8] ss:$12 sps:$4 sm:$0xff]  }
  0x50   :  { %1194 = vmatprep.subr.bf16.mxu0 %v2041_v15  ;;  %1835 = vmatprep.subr.bf16.mxu1 %v2074_v26  ;;  %v2103_v15 = vld [vmem:[%s2816_s3 + $0x1b4] ss:$12 sps:$4 sm:$0xff]  }
  0x53   :  { %1195 = vmatpush1.bf16.msra.mxu0 %v2039_v17  ;;  %1836 = vmatpush3.bf16.msra.mxu1 %v2075_v28  ;;  %v2106_v28 = vld [vmem:[%s2816_s3 + $0x1c8] ss:$12 sps:$4 sm:$0xff]  }
  0x54   :  { %1196 = vmatprep.subr.bf16.mxu0 %v2044_v19  ;;  %1837 = vmatprep.subr.bf16.mxu1 %v2079_v30  ;;  %v2113_v30 = vld [vmem:[%s2816_s3 + $0x1e4] ss:$12 sps:$4 sm:$0xff]  }
  0x57   :  { %1197 = vmatpush1.bf16.msra.mxu0 %v2042_v21  ;;  %1838 = vmatpush3.bf16.msra.mxu1 %v2080_v32  ;;  %v2101_v21 = vld [vmem:[%s2816_s3 + $0x1b0] ss:$12 sps:$4 sm:$0xff]   ;;  %v109_v32 = vsub.s32 2, %v2568_v55  ;;  %v2172_v55 = vld [vmem:[%s2818_s5 + $0x88] sm:$0xff]  }
  0x58   :  { %1198 = vmatprep.subr.bf16.mxu0 %v2047_v23  ;;  %1839 = vmatprep.subr.bf16.mxu1 %v2084_v45  ;;  %v2128_v45 = vld [vmem:[%s2816_s3 + $0x22c] ss:$12 sps:$4 sm:$0xff]  }
  0x5b   :  { %1199 = vmatpush1.bf16.msra.mxu0 %v2045_v25  ;;  %1840 = vmatpush3.bf16.msra.mxu1 %v2085_v47  ;;  %v2109_v25 = vld [vmem:[%s2816_s3 + $0x290] ss:$12 sps:$4 sm:$0xff]  }
  0x5c   :  { %1200 = vmatprep.subr.bf16.mxu0 %v2050_v27  ;;  %1841 = vmatprep.subr.bf16.mxu1 %v2089_v49  ;;  %v2130_v49 = vld [vmem:[%s2816_s3 + $0x230] ss:$12 sps:$4 sm:$0xff]  }
  0x5f   :  { %1201 = vmatpush1.bf16.msra.mxu0 %v2048_v29  ;;  %1842 = vmatpush3.bf16.msra.mxu1 %v2090_v51  ;;  %v2110_v29 = vld [vmem:[%s2816_s3 + $0x1d0] ss:$12 sps:$4 sm:$0xff]  }
  0x60   :  { %1202 = vmatprep.subr.bf16.mxu0 %v2053_v31  ;;  %1849 = vmatprep.subr.bf16.mxu1 %v2094_v53  ;;  %v2114_v31 = vld [vmem:[%s2816_s3 + $0x2a8] ss:$12 sps:$4 sm:$0xff]  }
  0x61   :  { %v2136_v53 = vld [vmem:[%s2816_s3 + $0x25c] ss:$12 sps:$4 sm:$0xff]  }
  0x63   :  { %1203 = vmatpush1.bf16.msra.mxu0 %v2051_v33  ;;  %v2111_v33 = vld [vmem:[%s2816_s3 + $0x1e0] ss:$12 sps:$4 sm:$0xff]  }
  0x64   :  { %1204 = vmatprep.subr.bf16.mxu0 %v2058_v34  ;;  %v2115_v34 = vld [vmem:[%s2816_s3 + $0x1e8] ss:$12 sps:$4 sm:$0xff]  }
  0x67   :  { %1205 = vmatpush1.bf16.msra.mxu0 %v2056_v35  ;;  %v2118_v35 = vld [vmem:[%s2816_s3 + $0x1fc] ss:$12 sps:$4 sm:$0xff]  }
  0x68   :  { %1206 = vmatprep.subr.bf16.mxu0 %v2063_v36  ;;  %v2119_v36 = vld [vmem:[%s2816_s3 + $0x2c0] ss:$12 sps:$4 sm:$0xff]  }
  0x6b   :  { %1207 = vmatpush1.bf16.msra.mxu0 %v2061_v37  ;;  %v110_v37 = vrot.slane %v2574_v57, %v109_v32  ;;  %v2139_v57 = vld [vmem:[%s2816_s3 + $0x274] ss:$12 sps:$4 sm:$0xff]  }
  0x6c   :  { %1208 = vmatprep.subr.bf16.mxu0 %v2068_v38  ;;  %v2116_v38 = vld [vmem:[%s2816_s3 + $0x1f8] ss:$12 sps:$4 sm:$0xff]  }
  0x6f   :  { %1209 = vmatpush1.bf16.msra.mxu0 %v2066_v39  ;;  %v2120_v39 = vld [vmem:[%s2816_s3 + $0x200] ss:$12 sps:$4 sm:$0xff]  }
  0x70   :  { %1210 = vmatprep.subr.bf16.mxu0 %v2073_v40  ;;  %v2123_v40 = vld [vmem:[%s2816_s3 + $0x214] ss:$12 sps:$4 sm:$0xff]  }
  0x73   :  { %1211 = vmatpush1.bf16.msra.mxu0 %v2071_v41  ;;  %v2124_v41 = vld [vmem:[%s2816_s3 + $0x2d8] ss:$12 sps:$4 sm:$0xff]  }
  0x74   :  { %1212 = vmatprep.subr.bf16.mxu0 %v2078_v42 }
  0x77   :  { %1213 = vmatpush1.bf16.msra.mxu0 %v2076_v43  ;;  %v2121_v43 = vld [vmem:[%s2816_s3 + $0x210] ss:$12 sps:$4 sm:$0xff]  }
  0x78   :  { %1214 = vmatprep.subr.bf16.mxu0 %v2083_v44  ;;  %v2125_v44 = vld [vmem:[%s2816_s3 + $0x218] ss:$12 sps:$4 sm:$0xff]  }
  0x7b   :  { %1215 = vmatpush1.bf16.msra.mxu0 %v2081_v46  ;;  %v2129_v46 = vld [vmem:[%s2816_s3 + $0x2f0] ss:$12 sps:$4 sm:$0xff]  }
  0x7c   :  { %1216 = vmatprep.subr.bf16.mxu0 %v2088_v48  ;;  %v2126_v48 = vld [vmem:[%s2816_s3 + $0x228] ss:$12 sps:$4 sm:$0xff]  }
  0x7f   :  { %1217 = vmatpush1.bf16.msra.mxu0 %v2086_v50  ;;  %v2133_v50 = vld [vmem:[%s2816_s3 + $0x244] ss:$12 sps:$4 sm:$0xff]  }
  0x80   :  { %1227 = vmatprep.subr.bf16.mxu0 %v2093_v52  ;;  %v2131_v52 = vld [vmem:[%s2816_s3 + $0x240] ss:$12 sps:$4 sm:$0xff]  }
 0x115   :  { %v473_v61 = vpop.f32.mrb[0].mxu0  ;;  %v514_v17 = vpop.f32.mrb[0].mxu1 }
 0x116   :  { %v474_v62 = vadd.f32 %v473_v61, %v102_v59  ;;  %v475_v63 = vpop.f32.mrb[1].mxu0  ;;  %v516_v18 = vpop.f32.mrb[1].mxu1  ;;  %v515_v42 = vadd.f32 %v514_v17, %v110_v37  ;;  %v2137_v59 = vld [vmem:[%s2816_s3 + $0x270] ss:$12 sps:$4 sm:$0xff]   ;;  %v2140_v61 = vld [vmem:[%s2816_s3 + $0x288] ss:$12 sps:$4 sm:$0xff]  }
 0x117   :  { %v476_v0 = vadd.f32 %v475_v63, %v106_v60  ;;  %v477_v1 = vpop.f32.mrb[2].mxu0  ;;  %v517_v19 = vadd.f32 %v516_v18, %v114_v12  ;;  %v518_v20 = vpop.f32.mrb[2].mxu1  ;;  %v2142_v60 = vld [vmem:[%s2816_s3 + $0x28c] ss:$12 sps:$4 sm:$0xff]   ;;  %v2167_v18 = vld [vmem:[%s2818_s5 + $0x70] sm:$0xff]  }
 0x118   :  { %v521_v2 = vmax.f32 %v474_v62, 0.0  ;;  %v478_v3 = vpop.f32.mrb[3].mxu0  ;;  %v519_v23 = vpop.f32.mrb[3].mxu1  ;;  %v523_v47 = vmax.f32 %v515_v42, 0.0  ;;  %v2145_v62 = vld [vmem:[%s2816_s3 + $0x2a4] ss:$12 sps:$4 sm:$0xff]  }
 0x119   :  { %v522_v4 = vmax.f32 %v476_v0, 0.0  ;;  %v524_v26 = vmax.f32 %v517_v19, 0.0  ;;  %v2143_v63 = vld [vmem:[%s2816_s3 + $0x2a0] ss:$12 sps:$4 sm:$0xff]   ;;  %v2148_v0 = vld [vmem:[%s2816_s3 + $0x2bc] ss:$12 sps:$4 sm:$0xff]  }
 0x11a   :  { %v525_v9 = vpack.c.bf16 %v521_v2, %v521_v2  ;;  %v527_v51 = vpack.c.bf16 %v523_v47, %v523_v47  ;;  %v2146_v1 = vld [vmem:[%s2816_s3 + $0x2b8] ss:$12 sps:$4 sm:$0xff]   ;;  %v2151_v2 = vld [vmem:[%s2816_s3 + $0x2d4] ss:$12 sps:$4 sm:$0xff]   ;;  %v2149_v3 = vld [vmem:[%s2816_s3 + $0x2d0] ss:$12 sps:$4 sm:$0xff]  }
 0x11b   :  { %v526_v6 = vpack.c.bf16 %v522_v4, %v522_v4  ;;  %v528_v27 = vpack.c.bf16 %v524_v26, %v524_v26  ;;  %v2154_v4 = vld [vmem:[%s2816_s3 + $0x2ec] ss:$12 sps:$4 sm:$0xff]   ;;  %v2168_v19 = vld [vmem:[%s2818_s5 + $0x30] sm:$0xff]  }
 0x11c   :  { %v2161_v12 = vld [vmem:[%s2818_s5 + $0x58] sm:$0xff]   ;;  %v2166_v17 = vld [vmem:[%s2818_s5 + $0x28] sm:$0xff]  }
 0x11d   :  { %1218 = vmatprep.mubr.bf16.mxu0 %v526_v6  ;;  %1300 = vmatprep.mubr.bf16.mxu1 %v526_v6  ;;  %v2155_v6 = vld [vmem:[%s2818_s5 + $0x40] sm:$0xff]   ;;  %v2169_v20 = vld [vmem:[%s2818_s5 + $0x78] sm:$0xff]  }
 0x11e   :  { %1219 = vmatmul.mubr.bf16.vlgmr.msra.gmra.mrb[4].mxu0 %v525_v9  ;;  %1301 = vmatmul.mubr.bf16.vlgmr.msra.gmra.mrb[4].mxu1 %v525_v9  ;;  %v2158_v9 = vld [vmem:[%s2818_s5 + $0x8] sm:$0xff]  }
 0x11f   :  { %1228 = vmatpush1.bf16.msra.mxu0 %v2091_v7  ;;  %1850 = vmatpush3.bf16.msra.mxu1 %v2095_v8  ;;  %v2156_v7 = vld [vmem:[%s2818_s5] sm:$0xff]   ;;  %v2157_v8 = vld [vmem:[%s2818_s5 + $0x48] sm:$0xff]  }
 0x120   :  { %1229 = vmatprep.subr.bf16.mxu0 %v2098_v10  ;;  %1851 = vmatprep.subr.bf16.mxu1 %v2099_v11  ;;  %v2159_v10 = vld [vmem:[%s2818_s5 + $0x50] sm:$0xff]  }
 0x121   :  { %1340 = vmatprep.mubr.bf16.mxu1 %v528_v27  ;;  %1259 = vmatprep.mubr.bf16.mxu0 %v528_v27  ;;  %v2160_v11 = vld [vmem:[%s2818_s5 + $0x10] sm:$0xff]  }
 0x123   :  { %1230 = vmatpush1.bf16.msra.mxu0 %v2096_v13  ;;  %1852 = vmatpush3.bf16.msra.mxu1 %v2100_v14  ;;  %v2162_v13 = vld [vmem:[%s2818_s5 + $0x18] sm:$0xff]   ;;  %v2163_v14 = vld [vmem:[%s2818_s5 + $0x60] sm:$0xff]  }
 0x124   :  { %1231 = vmatprep.subr.bf16.mxu0 %v2103_v15  ;;  %1853 = vmatprep.subr.bf16.mxu1 %v2104_v16  ;;  %v2164_v15 = vld [vmem:[%s2818_s5 + $0x20] sm:$0xff]   ;;  %v2165_v16 = vld [vmem:[%s2818_s5 + $0x68] sm:$0xff]  }
 0x127   :  { %1232 = vmatpush1.bf16.msra.mxu0 %v2101_v21  ;;  %1854 = vmatpush3.bf16.msra.mxu1 %v2105_v22  ;;  %v2170_v21 = vld [vmem:[%s2818_s5 + $0x38] sm:$0xff]   ;;  %v2181_v22 = vmov 0.0  }
 0x128   :  { %1233 = vmatprep.subr.bf16.mxu0 %v2108_v24  ;;  %1855 = vmatprep.subr.bf16.mxu1 %v2109_v25 }
 0x12b   :  { %1234 = vmatpush1.bf16.msra.mxu0 %v2106_v28  ;;  %1856 = vmatpush3.bf16.msra.mxu1 %v2110_v29  ;;  %v657_v28 = vld [vmem:[%s2819_s4] sm:$0x7] }
 0x12c   :  { %1235 = vmatprep.subr.bf16.mxu0 %v2113_v30  ;;  %1857 = vmatprep.subr.bf16.mxu1 %v2114_v31  ;;  %v670_v29 = vrot.slane %v657_v28, %v109_v32 }
 0x12f   :  { %1236 = vmatpush1.bf16.msra.mxu0 %v2111_v33  ;;  %1858 = vmatpush3.bf16.msra.mxu1 %v2115_v34 }
 0x130   :  { %1237 = vmatprep.subr.bf16.mxu0 %v2118_v35  ;;  %1859 = vmatprep.subr.bf16.mxu1 %v2119_v36 }
 0x133   :  { %1238 = vmatpush1.bf16.msra.mxu0 %v2116_v38  ;;  %1860 = vmatpush3.bf16.msra.mxu1 %v2120_v39  ;;  %v662_v38 = vrot.slane %v657_v28, %v101_v56  ;;  %v666_v39 = vrot.slane %v657_v28, %v105_v58  ;;  %v2173_v56 = vld [vmem:[%s2818_s5 + $0x90] sm:$0xff]   ;;  %v2174_v58 = vld [vmem:[%s2818_s5 + $0x98] sm:$0xff]  }
 0x134   :  { %1239 = vmatprep.subr.bf16.mxu0 %v2123_v40  ;;  %1861 = vmatprep.subr.bf16.mxu1 %v2124_v41 }
 0x137   :  { %1240 = vmatpush1.bf16.msra.mxu0 %v2121_v43  ;;  %1862 = vmatpush3.bf16.msra.mxu1 %v2125_v44 }
 0x138   :  { %1241 = vmatprep.subr.bf16.mxu0 %v2128_v45  ;;  %1863 = vmatprep.subr.bf16.mxu1 %v2129_v46 }
 0x13b   :  { %1242 = vmatpush1.bf16.msra.mxu0 %v2126_v48  ;;  %1864 = vmatpush3.bf16.msra.mxu1 %v2130_v49  ;;  %v2171_v48 = vld [vmem:[%s2818_s5 + $0x80] sm:$0xff]  }
 0x13c   :  { %1243 = vmatprep.subr.bf16.mxu0 %v2133_v50  ;;  %1871 = vmatprep.subr.bf16.mxu1 %v2155_v6  ;;  %v2175_v50 = vld [vmem:[%s2818_s5 + $0xa0] sm:$0xff]  }
 0x13e   :  { %1341 = vmatmul.mubr.bf16.vlgmr.msra.gmra.mrb[8].mxu1 %v527_v51 }
 0x13f   :  { %1244 = vmatpush1.bf16.msra.mxu0 %v2131_v52  ;;  %1872 = vmatpush3.bf16.msra.mxu1 %v2156_v7  ;;  %v2177_v52 = vld [vmem:[%s2818_s5 + $0xb0] sm:$0xff]  }
 0x140   :  { %1245 = vmatprep.subr.bf16.mxu0 %v2136_v53  ;;  %1873 = vmatprep.subr.bf16.mxu1 %v2157_v8  ;;  %v2178_v53 = vld [vmem:[%s2818_s5 + $0xb8] sm:$0xff]  }
 0x143   :  { %1246 = vmatpush1.bf16.msra.mxu0 %v2134_v54  ;;  %1874 = vmatpush3.bf16.msra.mxu1 %v2158_v9 }
 0x144   :  { %1247 = vmatprep.subr.bf16.mxu0 %v2139_v57  ;;  %1875 = vmatprep.subr.bf16.mxu1 %v2159_v10 }
 0x147   :  { %1248 = vmatpush1.bf16.msra.mxu0 %v2137_v59  ;;  %1876 = vmatpush3.bf16.msra.mxu1 %v2160_v11 }
 0x148   :  { %1249 = vmatprep.subr.bf16.mxu0 %v2142_v60  ;;  %1877 = vmatprep.subr.bf16.mxu1 %v2161_v12 }
 0x14b   :  { %1250 = vmatpush1.bf16.msra.mxu0 %v2140_v61  ;;  %1878 = vmatpush3.bf16.msra.mxu1 %v2162_v13 }
 0x14c   :  { %1251 = vmatprep.subr.bf16.mxu0 %v2145_v62  ;;  %1879 = vmatprep.subr.bf16.mxu1 %v2163_v14 }
 0x14f   :  { %1252 = vmatpush1.bf16.msra.mxu0 %v2143_v63  ;;  %1880 = vmatpush3.bf16.msra.mxu1 %v2164_v15 }
 0x150   :  { %1253 = vmatprep.subr.bf16.mxu0 %v2148_v0  ;;  %1881 = vmatprep.subr.bf16.mxu1 %v2165_v16  ;;  %v1802_v0 = vld [vmem:[%s2820_s6] ss:$0 sm:$0xff] }
 0x153   :  { %1254 = vmatpush1.bf16.msra.mxu0 %v2146_v1  ;;  %1882 = vmatpush3.bf16.msra.mxu1 %v2166_v17 }
 0x154   :  { %1255 = vmatprep.subr.bf16.mxu0 %v2151_v2  ;;  %1883 = vmatprep.subr.bf16.mxu1 %v2167_v18 }
 0x157   :  { %1256 = vmatpush1.bf16.msra.mxu0 %v2149_v3  ;;  %1884 = vmatpush3.bf16.msra.mxu1 %v2168_v19 }
 0x158   :  { %1257 = vmatprep.subr.bf16.mxu0 %v2154_v4  ;;  %1885 = vmatprep.subr.bf16.mxu1 %v2169_v20 }
 0x15b   :  { %1258 = vmatpush1.bf16.msra.mxu0 %v2152_v5  ;;  %1886 = vmatpush3.bf16.msra.mxu1 %v2170_v21 }
 0x15c   :  { %1902 = vmatprep.subr.bf16.mxu1 %v2181_v22 }
 0x15e   :  { %1260 = vmatmul.mubr.bf16.vlgmr.msra.gmra.mrb[4].mxu0 %v527_v51  ;;  %v2176_v51 = vld [vmem:[%s2818_s5 + $0xa8] sm:$0xff]  }
 0x1f1   :  { %v1843_v23 = vpop.f32.mrb[4].mxu1 }
 0x1f2   :  { %v1844_v24 = vpop.f32.mrb[5].mxu1 }
 0x1f3   :  { %v1845_v25 = vadd.f32 %v1844_v24, %v1843_v23  ;;  %v1846_v26 = vpop.f32.mrb[6].mxu1 }
 0x1f4   :  { %v1847_v27 = vpop.f32.mrb[7].mxu1 }
 0x1f5   :  { %v1303_v33 = vadd.f32 %v1845_v25, %v670_v29 }
 0x211   :  { %v1865_v30 = vpop.f32.mrb[8].mxu1 }
 0x212   :  { %v1866_v31 = vpop.f32.mrb[9].mxu1 }
 0x213   :  { %v1867_v34 = vadd.f32 %v1866_v31, %v1865_v30  ;;  %v1868_v35 = vpop.f32.mrb[10].mxu1 }
 0x214   :  { %v1869_v36 = vpop.f32.mrb[11].mxu1 }
 0x215   :  { %v1343_v37 = vadd.f32 %v1867_v34, %v1303_v33 }
 0x217   :  { %v1350_v54 = vmax.f32 %v1343_v37, 0.0 }
 0x219   :  { %v1353_v57 = vpack.c.bf16 %v1350_v54, %v1350_v54 }
 0x231   :  { %v1261_v40 = vpop.f32.mrb[4].mxu0 }
 0x232   :  { %v1922_v41 = vadd.f32 %v1261_v40, %v662_v38  ;;  %v1263_v42 = vpop.f32.mrb[5].mxu0 }
 0x233   :  { %v1923_v43 = vadd.f32 %v1263_v42, %v666_v39  ;;  %v1265_v44 = vpop.f32.mrb[6].mxu0 }
 0x234   :  { %v1348_v45 = vmax.f32 %v1922_v41, 0.0  ;;  %v1266_v32 = vpop.f32.mrb[7].mxu0 }
 0x235   :  { %v1349_v46 = vmax.f32 %v1923_v43, 0.0 }
 0x236   :  { %v1351_v49 = vpack.c.bf16 %v1348_v45, %v1348_v45 }
 0x237   :  { %v1352_v47 = vpack.c.bf16 %v1349_v46, %v1349_v46 }
 0x239   :  { %1585 = vmatprep.mubr.bf16.mxu1 %v1352_v47 }
 0x23a   :  { %1586 = vmatmul.mubr.bf16.vlgmr.msra.gmra.mrb[12].mxu1 %v1351_v49 }
 0x23b   :  { %1903 = vmatpush3.bf16.msra.mxu1 %v2171_v48  ;;  %1918 = vmatprep.mubr.msk.bf16.mxu1 %vm2182_vm0, %v2181_v22 }
 0x23c   :  { %1904 = vmatprep.subr.bf16.mxu1 %v2181_v22 }
 0x23f   :  { %1905 = vmatpush3.bf16.msra.mxu1 %v2172_v55 }
 0x240   :  { %1906 = vmatprep.subr.bf16.mxu1 %v2181_v22 }
 0x243   :  { %1907 = vmatpush3.bf16.msra.mxu1 %v2173_v56 }
 0x244   :  { %1908 = vmatprep.subr.bf16.mxu1 %v2181_v22 }
 0x247   :  { %1909 = vmatpush3.bf16.msra.mxu1 %v2174_v58 }
 0x248   :  { %1910 = vmatprep.subr.bf16.mxu1 %v2181_v22 }
 0x24b   :  { %1911 = vmatpush3.bf16.msra.mxu1 %v2175_v50 }
 0x24c   :  { %1912 = vmatprep.subr.bf16.mxu1 %v2181_v22 }
 0x24f   :  { %1913 = vmatpush3.bf16.msra.mxu1 %v2176_v51 }
 0x250   :  { %1914 = vmatprep.subr.bf16.mxu1 %v2181_v22 }
 0x253   :  { %1915 = vmatpush3.bf16.msra.mxu1 %v2177_v52 }
 0x254   :  { %1916 = vmatprep.subr.bf16.mxu1 %v2181_v22 }
 0x257   :  { %1917 = vmatpush3.bf16.msra.mxu1 %v2178_v53 }
 0x25a   :  { %1919 = vmatmul.mubr.bf16.vlgmr.msra.gmra.mrb[16].mxu1 %v1353_v57 }
 0x30d   :  { %v1887_v59 = vpop.f32.mrb[12].mxu1 }
 0x30e   :  { %v1888_v60 = vpop.f32.mrb[13].mxu1 }
 0x30f   :  { %v1889_v61 = vadd.f32 %v1888_v60, %v1887_v59  ;;  %v1890_v62 = vpop.f32.mrb[14].mxu1 }
 0x310   :  { %v1891_v63 = vpop.f32.mrb[15].mxu1 }
 0x311   :  { %v1588_v1 = vadd.f32 %v1889_v61, %v1802_v0 }
 0x32d   :  { %v1627_v2 = vpop.f32.mrb[16].mxu1 }
 0x32e   :  { %v1628_v3 = vadd.f32 %v1627_v2, %v1588_v1  ;;  %v1920_v4 = vpop.f32.mrb[17].mxu1 }
 0x32f   :  { %v1630_v5 = vpop.f32.mrb[18].mxu1 }
 0x330   :  { %v1633_v6 = vmul.f32 0.5, %v1628_v3  ;;  %v1921_v7 = vpop.f32.mrb[19].mxu1 }
 0x332   :  { %2179 = vtanh.f32 %v1633_v6 }
 0x33c   :  { %v2180_v8 = vpop.eup %2179 }
 0x33d   :  { %v1635_v9 = vadd.f32 1.0, %v2180_v8 }
 0x33f   :  { %v1636_v10 = vmul.f32 0.5, %v1635_v9 }
 0x341   :  { %1637 = vst [vmem:[%s2821_s7] sm:$0xf] %v1636_v10 }

</bundles_post_ra>
